<compile_context>
chip_gen: v6e
topology: v6e:2x2x1
jax: 0.10.0
libtpu: 0.0.40
codegen_flags: <defaults>
</compile_context>

<pallas_src>
import functools

import jax
import jax.numpy as jnp
from jax.experimental import pallas as pl
from jax.experimental.pallas import tpu as pltpu

LANES = 128
SUBLANES = 8
ROW_ALIGN = 16          # satisfies both f32 (8,128) and bf16 (16,128) packing
NUM_CORES = 2           # v7x megacore split; serial (harmless) on v5e / v6e
DEFAULT_ROW_TILE = 1024  # 512 KiB f32 block -> well under every VMEM budget


def _sse_kernel(x_ref, y_ref, o_ref, *, valid_rows, row_tile, blocks_per_core,
                needs_mask):
    """Accumulates per-core sum-of-squared-errors into a (1, 8, 128) block."""
    c = pl.program_id(0)
    i = pl.program_id(1)

    @pl.when(i == 0)
    def _():
        o_ref[...] = jnp.zeros_like(o_ref)

    # Cast on the VPU (free under the DMA); HBM traffic stays in native dtype.
    d = x_ref[...].astype(jnp.float32) - y_ref[...].astype(jnp.float32)
    sq = d * d

    if needs_mask:
        # Mask rows beyond the real tensor: the ragged last block and the
        # duplicated (clamped) blocks on the second core contribute zero.
        block_idx = c * blocks_per_core + i
        row_ids = block_idx * row_tile + jax.lax.broadcasted_iota(
            jnp.int32, (row_tile, LANES), 0)
        sq = jnp.where(row_ids < valid_rows, sq, 0.0)

    # VPU-only fold of the (row_tile, 128) block into the (8, 128) accumulator;
    # no per-step cross-lane reduce, no per-step scalar store.
    o_ref[...] += jnp.sum(
        sq.reshape(-1, SUBLANES, LANES), axis=0
    ).reshape(1, SUBLANES, LANES)


@functools.partial(jax.jit, static_argnames=("row_tile",))
def _mse_pallas(x_hat: jax.Array, gt: jax.Array,
                row_tile: int = DEFAULT_ROW_TILE) -> jax.Array:
    """Mean squared error over all elements, computed in a Pallas kernel."""
    assert x_hat.shape == gt.shape
    n_elems = x_hat.size
    assert n_elems % LANES == 0
    rows = n_elems // LANES

    # Free reshapes (contiguous bitcast); no pad / astype materialization.
    x2d = x_hat.reshape(rows, LANES)
    y2d = gt.reshape(rows, LANES)

    rt = min(row_tile, rows)
    rt = max((rt // ROW_ALIGN) * ROW_ALIGN, ROW_ALIGN)
    num_blocks = pl.cdiv(rows, rt)
    blocks_per_core = pl.cdiv(num_blocks, NUM_CORES)
    # Mask only when the (core x block x tile) coverage exceeds the real rows.
    needs_mask = (NUM_CORES * blocks_per_core * rt) != rows

    def in_index_map(c, i):
        # Clamp so over-range blocks on the last core re-read the final valid
        # block (their rows are masked to zero inside the kernel).
        return (jnp.minimum(c * blocks_per_core + i, num_blocks - 1), 0)

    kernel = functools.partial(
        _sse_kernel,
        valid_rows=rows,
        row_tile=rt,
        blocks_per_core=blocks_per_core,
        needs_mask=needs_mask,
    )

    partial_sse = pl.pallas_call(
        kernel,
        out_shape=jax.ShapeDtypeStruct((NUM_CORES, SUBLANES, LANES),
                                       jnp.float32),
        grid_spec=pltpu.PrefetchScalarGridSpec(
            num_scalar_prefetch=0,
            grid=(NUM_CORES, blocks_per_core),
            in_specs=[
                pl.BlockSpec((rt, LANES), in_index_map),
                pl.BlockSpec((rt, LANES), in_index_map),
            ],
            out_specs=pl.BlockSpec((1, SUBLANES, LANES),
                                   lambda c, i: (c, 0, 0)),
        ),
        compiler_params=pltpu.CompilerParams(
            dimension_semantics=("parallel", "arbitrary")),
    )(x2d, y2d)

    # Tiny (2, 8, 128) final reduce + mean normalization in plain XLA.
    return jnp.sum(partial_sse) / jnp.float32(n_elems)


def _mse(x_hat: jax.Array, gt: jax.Array,
         row_tile: int = DEFAULT_ROW_TILE) -> jax.Array:
    n_elems = x_hat.size
    if n_elems % LANES != 0 or (n_elems // LANES) < ROW_ALIGN:
        # Tiny / lane-ragged tensors: a fused XLA reduce beats kernel launch
        # overhead.  (A production build would raise this threshold; kept
        # minimal here so the small demo exercises the Pallas path.)
        return jnp.mean(
            (x_hat.astype(jnp.float32) - gt.astype(jnp.float32)) ** 2)
    return _mse_pallas(x_hat, gt, row_tile=row_tile)


class DistortionLoss:
    """JAX/Pallas port of lib/losses/compression_losses.py::DistortionLoss."""

    def __init__(self, aux_weights=None):
        self._aux_weights = aux_weights or {}

    def __call__(self, model_output: dict, gt_image: jax.Array) -> dict:
        assert "x_hat" in model_output
        x_hat = model_output["x_hat"]
        mse = _mse(x_hat, gt_image)
        total_loss = mse
        losses = {"loss_distortion": mse}
        # Aux losses are plain scalars: weighted accumulation is glue, not a
        # kernel-worthy hot path.
        for k, v in model_output.items():
            if k.startswith("loss_") and k in self._aux_weights:
                losses[k] = v
                total_loss = total_loss + self._aux_weights[k] * v
        losses["loss"] = total_loss
        return losses


if __name__ == "__main__":
    key = jax.random.PRNGKey(0)
    k1, k2, k3, k4, k5 = jax.random.split(key, 5)

    # Case 1: NCHW demo shape through the full DistortionLoss module (f32).
    B, C, H, W = 2, 4, 16, 16
    x_hat = jax.random.normal(k1, (B, C, H, W), dtype=jnp.float32)
    gt_image = jax.random.normal(k2, (B, C, H, W), dtype=jnp.float32)
    aux = jax.random.uniform(k3, (), dtype=jnp.float32)

    model_output = {
        "x_hat": x_hat,
        "loss_aux": aux,            # picked up via aux_weights
        "loss_ignored": aux * 2.0,  # not in aux_weights -> ignored
    }
    loss_fn = DistortionLoss(aux_weights={"loss_aux": 0.1})
    losses = loss_fn(model_output, gt_image)
    jax.block_until_ready(losses["loss"])

    ref_mse = jnp.mean((x_hat - gt_image) ** 2)
    ref_total = ref_mse + 0.1 * aux
    assert jnp.allclose(losses["loss_distortion"], ref_mse, rtol=1e-5, atol=1e-6)
    assert jnp.allclose(losses["loss"], ref_total, rtol=1e-5, atol=1e-6)

    # Case 2: ragged row count + multi-step accumulation (small row_tile forces
    # several blocks per core and a masked tail / clamped duplicate block).
    x2 = jax.random.normal(k4, (1, 3, 24, 128), dtype=jnp.float32)
    y2 = jax.random.normal(k5, (1, 3, 24, 128), dtype=jnp.float32)
    mse2 = _mse(x2, y2, row_tile=16)
    jax.block_until_ready(mse2)
    assert jnp.allclose(mse2, jnp.mean((x2 - y2) ** 2), rtol=1e-5, atol=1e-6)

    # Case 3: bf16 inputs stay bf16 into the kernel (half the HBM read bytes).
    xb = x_hat.astype(jnp.bfloat16)
    yb = gt_image.astype(jnp.bfloat16)
    mseb = _mse(xb, yb)
    jax.block_until_ready(mseb)
    ref_b = jnp.mean((xb.astype(jnp.float32) - yb.astype(jnp.float32)) ** 2)
    assert jnp.allclose(mseb, ref_b, rtol=1e-5, atol=1e-6)

    print("KERNEL_OK")
</pallas_src>

<mosaic_0001>
module attributes {stable_mosaic.version = 11 : i64} {
  func.func @_sse_kernel(%arg0: i32, %arg1: i32, %arg2: memref<16x128xf32, #tpu.memory_space<vmem>>, %arg3: memref<16x128xf32, #tpu.memory_space<vmem>>, %arg4: memref<1x8x128xf32, #tpu.memory_space<vmem>>) attributes {dimension_semantics = [#tpu.dimension_semantics<parallel>, #tpu.dimension_semantics<arbitrary>], iteration_bounds = array<i64: 2, 1>, scalar_prefetch = 0 : i64, scratch_operands = 0 : i64, tpu.core_type = #tpu.core_type<tc>, window_params = [{transform_indices = @transform_0, window_bounds = array<i64: 16, 128>}, {transform_indices = @transform_1, window_bounds = array<i64: 16, 128>}, {transform_indices = @transform_2, window_bounds = array<i64: 1, 8, 128>}]} {
    %c0_i32 = arith.constant 0 : i32
    %0 = arith.cmpi eq, %arg1, %c0_i32 : i32
    %1 = arith.extui %0 : i1 to i32
    %c0_i32_0 = arith.constant 0 : i32
    %2 = arith.cmpi ne, %1, %c0_i32_0 : i32
    scf.if %2 {
      %cst_12 = arith.constant 0.000000e+00 : f32
      %23 = vector.broadcast %cst_12 : f32 to vector<1x8x128xf32>
      %c0_13 = arith.constant 0 : index
      %c0_14 = arith.constant 0 : index
      %c0_15 = arith.constant 0 : index
      %24 = vector.load %arg4[%c0_13, %c0_14, %c0_15] : memref<1x8x128xf32, #tpu.memory_space<vmem>>, vector<1x8x128xf32>
      tpu.vector_store %arg4[%c0_13, %c0_14, %c0_15], %23 {strides = array<i32>} : memref<1x8x128xf32, #tpu.memory_space<vmem>>, vector<1x8x128xf32>,
    } else {
    }
    %c0 = arith.constant 0 : index
    %c0_1 = arith.constant 0 : index
    %3 = vector.load %arg2[%c0, %c0_1] : memref<16x128xf32, #tpu.memory_space<vmem>>, vector<16x128xf32>
    %c0_2 = arith.constant 0 : index
    %c0_3 = arith.constant 0 : index
    %4 = vector.load %arg3[%c0_2, %c0_3] : memref<16x128xf32, #tpu.memory_space<vmem>>, vector<16x128xf32>
    %5 = arith.subf %3, %4 : vector<16x128xf32>
    %6 = arith.mulf %5, %5 : vector<16x128xf32>
    %c1_i32 = arith.constant 1 : i32
    %7 = arith.muli %arg0, %c1_i32 : i32
    %8 = arith.addi %7, %arg1 : i32
    %c16_i32 = arith.constant 16 : i32
    %9 = arith.muli %8, %c16_i32 : i32
    %10 = tpu.iota {dimensions = array<i32: 0>} : vector<16x128xi32>
    %11 = vector.broadcast %9 : i32 to vector<16x128xi32>
    %12 = arith.addi %11, %10 : vector<16x128xi32>
    %c16_i32_4 = arith.constant 16 : i32
    %13 = vector.broadcast %c16_i32_4 : i32 to vector<16x128xi32>
    %14 = arith.cmpi slt, %12, %13 : vector<16x128xi32>
    %cst = arith.constant 0.000000e+00 : f32
    %15 = vector.broadcast %cst : f32 to vector<16x128xf32>
    %16 = arith.select %14, %6, %15 : vector<16x128xi1>, vector<16x128xf32>
    %c0_5 = arith.constant 0 : index
    %c0_6 = arith.constant 0 : index
    %c0_7 = arith.constant 0 : index
    %17 = vector.load %arg4[%c0_5, %c0_6, %c0_7] : memref<1x8x128xf32, #tpu.memory_space<vmem>>, vector<1x8x128xf32>
    %18 = vector.shape_cast %16 : vector<16x128xf32> to vector<2x8x128xf32>
    %cst_8 = arith.constant dense<0.000000e+00> : vector<8x128xf32>
    %19 = vector.multi_reduction <add>, %18, %cst_8 [0] : vector<2x8x128xf32> to vector<8x128xf32>
    %20 = vector.shape_cast %19 : vector<8x128xf32> to vector<1x8x128xf32>
    %21 = arith.addf %17, %20 : vector<1x8x128xf32>
    %c0_9 = arith.constant 0 : index
    %c0_10 = arith.constant 0 : index
    %c0_11 = arith.constant 0 : index
    %22 = vector.load %arg4[%c0_9, %c0_10, %c0_11] : memref<1x8x128xf32, #tpu.memory_space<vmem>>, vector<1x8x128xf32>
    tpu.vector_store %arg4[%c0_9, %c0_10, %c0_11], %21 {strides = array<i32>} : memref<1x8x128xf32, #tpu.memory_space<vmem>>, vector<1x8x128xf32>,
    return
  }
  func.func @transform_0(%arg0: i32, %arg1: i32) -> (i32, i32) {
    %c1_i32 = arith.constant 1 : i32
    %0 = arith.muli %arg0, %c1_i32 : i32
    %1 = arith.addi %0, %arg1 : i32
    %c0_i32 = arith.constant 0 : i32
    %2 = arith.minsi %1, %c0_i32 : i32
    %c0_i32_0 = arith.constant 0 : i32
    %c0_i32_1 = arith.constant 0 : i32
    return %2, %c0_i32_0 : i32, i32
  }
  func.func @transform_1(%arg0: i32, %arg1: i32) -> (i32, i32) {
    %c1_i32 = arith.constant 1 : i32
    %0 = arith.muli %arg0, %c1_i32 : i32
    %1 = arith.addi %0, %arg1 : i32
    %c0_i32 = arith.constant 0 : i32
    %2 = arith.minsi %1, %c0_i32 : i32
    %c0_i32_0 = arith.constant 0 : i32
    %c0_i32_1 = arith.constant 0 : i32
    return %2, %c0_i32_0 : i32, i32
  }
  func.func @transform_2(%arg0: i32, %arg1: i32) -> (i32, i32, i32) {
    %c0_i32 = arith.constant 0 : i32
    %c0_i32_0 = arith.constant 0 : i32
    %c0_i32_1 = arith.constant 0 : i32
    return %arg0, %c0_i32, %c0_i32_0 : i32, i32, i32
  }
}

</mosaic_0001>

<bundles_post_ra>
// kernel: _mse_pallas.1
= control target key start
LH: loop header
LB: loop body
LE: loop exit
PB: predicated region body
PF: predicated region fallthrough
CT: control target
= control target key end

     0   :  { %s399_s9 = smov 0   ;;  %s401_s10 = smov 0   ;;  %s435_s0 = inlined_call_operand.vmem [shape: f32[16,128], index: 0, kind: input, shape index: {}]   ;;  %s436_s1 = inlined_call_operand.vmem [shape: f32[16,128], index: 1, kind: input, shape index: {}]   ;;  %s437_s2 = inlined_call_operand.vmem [shape: f32[2,8,128], index: 2, kind: output, shape index: {}]  }
   0x1   :  { %s403_s11 = smov 0  }
   0x2 LB: > { %s24_s12 = sadd.s32 1, %s378_s10  ;;  %p326_p0 = scmp.ge.s32.totalorder %s382_s11, 1  ;;  %s382_s11 = sphi %s403_s11, %s12_s11   ;;  %s378_s10 = sphi %s401_s10, %s439_s10   ;;  %s374_s9 = sphi %s399_s9, %s438_s9  }
   0x3   : > { %p26_p1 = scmp.ge.s32.totalorder %s24_s12, 2  ;;  %p160_p2 = scmp.lt.s32.totalorder %s382_s11, 3 }
   0x5   : > { %s441_s12 = smov (%p26_p1, %s24_s12), 0  ;;  %p161_p3 = pnand %p326_p0, %p160_p2 }
   0x6   : > { %p193_p4 = scmp.lt.s32.totalorder (!%p161_p3), %s374_s9, 0  ;;  %s332_s14 = sshll.u32 (!%p161_p3), %s374_s9, 4 }
   0x7   : > { %164 = sbr.rel (%p161_p3) target bundleno = 30 (0x1e), region = 28  ;;  %p216_p6 = scmp.lt.s32.totalorder (!%p161_p3), %s374_s9, 1 }
   0xc   : > { %v235_v0 = vlaneseq  ;;  %s194_s13 = scalar_select %p193_p4, %s374_s9, 0  ;;  %v238_v3 = vstv %s332_s14 }
   0xd   : > { %s445_s9 = smov (!%p216_p6, %s374_s9), 1 }
   0xe   : > { %v236_v1 = vshrl.u32 %v235_v0, 7  ;;  %s327_s15 = sshll.u32 %s194_s13, 1  ;;  %s331_s23 = sshll.u32 %s445_s9, 3 }
   0xf   : > { %p196_p5 = scmp.lt.s32.totalorder %s327_s15, 1  ;;  %s219_s26 = scalar_lea.vmem %s437_s2, %s331_s23 }
  0x10   : > { %v237_v2 = vadd.s32 8, %v236_v1  ;;  %v239_v4 = vadd.s32 %v238_v3, %v236_v1 }
  0x11   : > { %s443_s15 = smov (!%p196_p5, %s327_s15), 1 }
  0x12   : > { %s328_s16 = sshll.u32 %s443_s15, 3  ;;  %v240_v5 = vadd.s32 %v238_v3, %v237_v2  ;;  %vm241_vm0 = vcmp.lt.s32.totalorder %v239_v4, 16 }
  0x13   : > { %s199_s19 = scalar_lea.vmem %s435_s0, %s328_s16  ;;  %s211_s22 = scalar_lea.vmem %s436_s1, %s328_s16 }
  0x14   : > { %v225_v6 = vld [vmem:[%s199_s19] sm:$0xff]  ;;  %v226_v7 = vld [vmem:[%s199_s19 + $0x8] sm:$0xff]  ;;  %vm242_vm1 = vcmp.lt.s32.totalorder %v240_v5, 16 }
  0x15   : > { %v227_v8 = vld [vmem:[%s211_s22] sm:$0xff]  ;;  %v228_v9 = vld [vmem:[%s211_s22 + $0x8] sm:$0xff] }
  0x16   : > { %v229_v10 = vsub.f32 %v225_v6, %v227_v8  ;;  %v230_v11 = vsub.f32 %v226_v7, %v228_v9 }
  0x18   : > { %v231_v12 = vmul.f32 %v229_v10, %v229_v10  ;;  %v232_v13 = vmul.f32 %v230_v11, %v230_v11 }
  0x1a   : > { %v243_v14 = vsel %vm241_vm0, %v231_v12, 0.0  ;;  %v244_v15 = vsel %vm242_vm1, %v232_v13, 0.0 }
  0x1b   : > { %v246_v16 = vadd.f32 %v244_v15, %v243_v14 }
  0x1d   : > { %248 = vst [vmem:[%s219_s26] sm:$0xff] %v246_v16 }
  0x1e PF: > { %s12_s11 = sadd.s32 1, %s382_s11   ;;  %s438_s9 = smov %s378_s10 }
  0x1f   : > { %p9_p7 = scmp.ge.s32.totalorder %s12_s11, 4   ;;  %s439_s10 = smov %s441_s12 }
  0x21   :  { %11 = sbr.rel (!%p9_p7) target bundleno = 2 (0x2), region = 65 }

</bundles_post_ra>
